<compile_context>
chip_gen: v6e
topology: v6e:2x2x1
jax: 0.10.0
libtpu: 0.0.40
codegen_flags: <defaults>
</compile_context>

<pallas_src>
import jax
import jax.numpy as jnp
from jax import lax
from jax.experimental import pallas as pl
from jax.experimental.pallas import tpu as pltpu


# ----------------------------------------------------------------------------
# Kernels
# ----------------------------------------------------------------------------
def _trunk(x, w_sh_eff, b_eff):
    """Shared trunk relu(bn(Sh(x))) in transposed layout.

    x:        (tile_B, H)  natural layout (batch rows, hidden on lanes)
    w_sh_eff: (Z, H)       BN-folded Sh weight
    b_eff:    (Z, 1)       BN-folded bias
    returns   (Z, tile_B)  features on sublanes, batch on lanes
    """
    z = lax.dot_general(
        w_sh_eff, x,
        dimension_numbers=(((1,), (1,)), ((), ())),   # contract H with H -> (Z, B)
        preferred_element_type=jnp.float32)
    return jnp.maximum(z + b_eff, 0.0)


def _mtl_kernel(s_ref, t_ref, w_sh_ref, b_sh_ref, w_s1_ref, b_s1_ref,
                w_s2_ref, w_t_ref, b_s2_ref, b_t_ref, ys_ref, yt_ref):
    # s_ref/t_ref: (tile_B, H); w_sh: (Z, H); b_sh/b_s1/w_s2/w_t: (Z, 1)
    # b_s2/b_t: (1, 1) in SMEM; outputs: (1, tile_B) lane-dense.
    w_sh = w_sh_ref[...]
    b_sh = b_sh_ref[...]

    zs = _trunk(s_ref[...], w_sh, b_sh)                      # (Z, B)
    zt = _trunk(t_ref[...], w_sh, b_sh)                      # (Z, B)

    # Source head: Linear(Z,Z) -> (Dropout=id) -> ReLU -> Linear(Z,1)
    h = jnp.dot(w_s1_ref[...], zs,
                preferred_element_type=jnp.float32) + b_s1_ref[...]
    h = jnp.maximum(h, 0.0)                                  # (Z, B)
    # 1-wide head as VPU multiply + sublane reduce (keeps the MXU out of N=1).
    ys_ref[...] = (jnp.sum(h * w_s2_ref[...], axis=0, keepdims=True)
                   + b_s2_ref[0, 0])                         # (1, B)

    # Target head: Linear(Z,1) -> Sigmoid
    yt = jnp.sum(zt * w_t_ref[...], axis=0, keepdims=True) + b_t_ref[0, 0]
    yt_ref[...] = jax.nn.sigmoid(yt)                         # (1, B)


def _mtl_target_kernel(t_ref, w_sh_ref, b_sh_ref, w_t_ref, b_t_ref, yt_ref):
    # S is None branch: only the Target head.
    zt = _trunk(t_ref[...], w_sh_ref[...], b_sh_ref[...])
    yt = jnp.sum(zt * w_t_ref[...], axis=0, keepdims=True) + b_t_ref[0, 0]
    yt_ref[...] = jax.nn.sigmoid(yt)


# ----------------------------------------------------------------------------
# Wrapper
# ----------------------------------------------------------------------------
_VMEM = pl.BlockSpec(memory_space=pltpu.MemorySpace.VMEM)
_SMEM = pl.BlockSpec(memory_space=pltpu.MemorySpace.SMEM)


def mtl_forward(S, T, params, *, eps=1e-5, block_b=1024):
    """Inference forward of MTL.  S may be None.  Returns (yhat_S, yhat_T), each (B,1)."""
    B, H = T.shape
    Z = params["w_sh"].shape[0]

    # Fold eval-mode BatchNorm1d into the shared Linear (parameter-only work).
    scale = params["bn_gamma"] * lax.rsqrt(params["bn_var"] + eps)       # (Z,)
    w_sh_eff = params["w_sh"] * scale[:, None]                           # (Z, H)
    b_eff = (params["b_sh"] * scale + params["bn_beta"]
             - params["bn_mean"] * scale).reshape(Z, 1)                  # (Z, 1)

    w_t_col = params["w_t"].reshape(Z, 1)
    b_t_s = params["b_t"].reshape(1, 1)

    # ---------------- S is None: Target head only ----------------
    if S is None:
        if B <= block_b:
            yt = pl.pallas_call(
                _mtl_target_kernel,
                out_shape=jax.ShapeDtypeStruct((1, B), jnp.float32),
                in_specs=[_VMEM, _VMEM, _VMEM, _VMEM, _SMEM],
                out_specs=_VMEM,
            )(T, w_sh_eff, b_eff, w_t_col, b_t_s)
        else:
            nb = pl.cdiv(B, block_b)
            yt = pl.pallas_call(
                _mtl_target_kernel,
                out_shape=jax.ShapeDtypeStruct((1, B), jnp.float32),
                grid=(nb,),
                in_specs=[
                    pl.BlockSpec((block_b, H), lambda i: (i, 0)),
                    pl.BlockSpec((Z, H), lambda i: (0, 0)),
                    pl.BlockSpec((Z, 1), lambda i: (0, 0)),
                    pl.BlockSpec((Z, 1), lambda i: (0, 0)),
                    _SMEM,
                ],
                out_specs=pl.BlockSpec((1, block_b), lambda i: (0, i)),
                compiler_params=pltpu.CompilerParams(
                    dimension_semantics=("parallel",)),
            )(T, w_sh_eff, b_eff, w_t_col, b_t_s)
        return None, yt.reshape(B, 1)

    # ---------------- Both branches ----------------
    w_s1 = params["w_s1"]                                                # (Z, Z)
    b_s1_col = params["b_s1"].reshape(Z, 1)
    w_s2_col = params["w_s2"].reshape(Z, 1)
    b_s2_s = params["b_s2"].reshape(1, 1)

    out_shape = (jax.ShapeDtypeStruct((1, B), jnp.float32),
                 jax.ShapeDtypeStruct((1, B), jnp.float32))

    if B <= block_b:
        # Small batch: single VMEM-resident block, no grid, no per-step overhead.
        ys, yt = pl.pallas_call(
            _mtl_kernel,
            out_shape=out_shape,
            in_specs=[_VMEM] * 8 + [_SMEM, _SMEM],
            out_specs=(_VMEM, _VMEM),
        )(S, T, w_sh_eff, b_eff, w_s1, b_s1_col, w_s2_col, w_t_col,
          b_s2_s, b_t_s)
    else:
        # Large batch: tile the batch axis; "parallel" lets the pipeliner
        # double-buffer the x DMA and shards across TensorCores on v7x.
        nb = pl.cdiv(B, block_b)
        ys, yt = pl.pallas_call(
            _mtl_kernel,
            out_shape=out_shape,
            grid=(nb,),
            in_specs=[
                pl.BlockSpec((block_b, H), lambda i: (i, 0)),
                pl.BlockSpec((block_b, H), lambda i: (i, 0)),
                pl.BlockSpec((Z, H), lambda i: (0, 0)),
                pl.BlockSpec((Z, 1), lambda i: (0, 0)),
                pl.BlockSpec((Z, Z), lambda i: (0, 0)),
                pl.BlockSpec((Z, 1), lambda i: (0, 0)),
                pl.BlockSpec((Z, 1), lambda i: (0, 0)),
                pl.BlockSpec((Z, 1), lambda i: (0, 0)),
                _SMEM,
                _SMEM,
            ],
            out_specs=(pl.BlockSpec((1, block_b), lambda i: (0, i)),
                       pl.BlockSpec((1, block_b), lambda i: (0, i))),
            compiler_params=pltpu.CompilerParams(
                dimension_semantics=("parallel",)),
        )(S, T, w_sh_eff, b_eff, w_s1, b_s1_col, w_s2_col, w_t_col,
          b_s2_s, b_t_s)

    return ys.reshape(B, 1), yt.reshape(B, 1)


# ----------------------------------------------------------------------------
# Pure-JAX reference (torch eval-mode semantics)
# ----------------------------------------------------------------------------
def reference_forward(S, T, params, eps=1e-5):
    def trunk(x):
        z = x @ params["w_sh"].T + params["b_sh"]
        z = ((z - params["bn_mean"]) * lax.rsqrt(params["bn_var"] + eps)
             * params["bn_gamma"] + params["bn_beta"])
        return jax.nn.relu(z)

    zt = trunk(T)
    yt = jax.nn.sigmoid(zt @ params["w_t"].T + params["b_t"])
    if S is None:
        return None, yt
    zs = trunk(S)
    h = jax.nn.relu(zs @ params["w_s1"].T + params["b_s1"])
    ys = h @ params["w_s2"].T + params["b_s2"]
    return ys, yt


if __name__ == "__main__":
    key = jax.random.PRNGKey(0)
    ks = jax.random.split(key, 16)

    batch, h_dim, z_dim = 8, 32, 16
    dropout_rate = 0.5  # identity at inference

    def lin_init(kw, kb, out_f, in_f):
        bound = 1.0 / (in_f ** 0.5)
        w = jax.random.uniform(kw, (out_f, in_f), jnp.float32, -bound, bound)
        b = jax.random.uniform(kb, (out_f,), jnp.float32, -bound, bound)
        return w, b

    w_sh, b_sh = lin_init(ks[0], ks[1], z_dim, h_dim)
    w_s1, b_s1 = lin_init(ks[2], ks[3], z_dim, z_dim)
    w_s2, b_s2 = lin_init(ks[4], ks[5], 1, z_dim)
    w_t, b_t = lin_init(ks[6], ks[7], 1, z_dim)

    params = dict(
        w_sh=w_sh, b_sh=b_sh,
        bn_gamma=jax.random.uniform(ks[8], (z_dim,), jnp.float32, 0.5, 1.5),
        bn_beta=0.1 * jax.random.normal(ks[9], (z_dim,), jnp.float32),
        bn_mean=0.1 * jax.random.normal(ks[10], (z_dim,), jnp.float32),
        bn_var=jax.random.uniform(ks[11], (z_dim,), jnp.float32, 0.5, 1.5),
        w_s1=w_s1, b_s1=b_s1, w_s2=w_s2, b_s2=b_s2, w_t=w_t, b_t=b_t,
    )

    S = jax.random.normal(ks[12], (batch, h_dim), jnp.float32)
    T = jax.random.normal(ks[13], (batch, h_dim), jnp.float32)

    # 1) Small batch: single-block (no grid) path.
    ys, yt = mtl_forward(S, T, params)
    ys, yt = jax.block_until_ready((ys, yt))
    ys_ref, yt_ref = reference_forward(S, T, params)
    assert ys.shape == (batch, 1) and yt.shape == (batch, 1)
    assert jnp.allclose(ys, ys_ref, atol=1e-5, rtol=1e-5)
    assert jnp.allclose(yt, yt_ref, atol=1e-5, rtol=1e-5)

    # 2) S is None branch.
    ys_n, yt_n = mtl_forward(None, T, params)
    yt_n = jax.block_until_ready(yt_n)
    assert ys_n is None
    assert jnp.allclose(yt_n, yt_ref, atol=1e-5, rtol=1e-5)

    # 3) Larger batch: exercises the batch-tiled "parallel" grid path
    #    (including a remainder block).
    big_b = 640
    S_big = jax.random.normal(ks[14], (big_b, h_dim), jnp.float32)
    T_big = jax.random.normal(ks[15], (big_b, h_dim), jnp.float32)
    ys_b, yt_b = mtl_forward(S_big, T_big, params, block_b=256)
    ys_b, yt_b = jax.block_until_ready((ys_b, yt_b))
    ys_b_ref, yt_b_ref = reference_forward(S_big, T_big, params)
    assert ys_b.shape == (big_b, 1) and yt_b.shape == (big_b, 1)
    assert jnp.allclose(ys_b, ys_b_ref, atol=1e-5, rtol=1e-5)
    assert jnp.allclose(yt_b, yt_b_ref, atol=1e-5, rtol=1e-5)

    print("KERNEL_OK")
</pallas_src>

<mosaic_0001>
module attributes {stable_mosaic.version = 11 : i64} {
  func.func @_mtl_kernel(%arg0: memref<8x32xf32, #tpu.memory_space<vmem>>, %arg1: memref<8x32xf32, #tpu.memory_space<vmem>>, %arg2: memref<16x32xf32, #tpu.memory_space<vmem>>, %arg3: memref<16x1xf32, #tpu.memory_space<vmem>>, %arg4: memref<16x16xf32, #tpu.memory_space<vmem>>, %arg5: memref<16x1xf32, #tpu.memory_space<vmem>>, %arg6: memref<16x1xf32, #tpu.memory_space<vmem>>, %arg7: memref<16x1xf32, #tpu.memory_space<vmem>>, %arg8: memref<1x1xf32, #tpu.memory_space<smem>>, %arg9: memref<1x1xf32, #tpu.memory_space<smem>>, %arg10: memref<1x8xf32, #tpu.memory_space<vmem>>, %arg11: memref<1x8xf32, #tpu.memory_space<vmem>>) attributes {dimension_semantics = [], scalar_prefetch = 0 : i64, scratch_operands = 0 : i64, tpu.core_type = #tpu.core_type<tc>} {
    %c0 = arith.constant 0 : index
    %c0_0 = arith.constant 0 : index
    %0 = vector.load %arg2[%c0, %c0_0] : memref<16x32xf32, #tpu.memory_space<vmem>>, vector<16x32xf32>
    %c0_1 = arith.constant 0 : index
    %c0_2 = arith.constant 0 : index
    %1 = vector.load %arg3[%c0_1, %c0_2] : memref<16x1xf32, #tpu.memory_space<vmem>>, vector<16x1xf32>
    %c0_3 = arith.constant 0 : index
    %c0_4 = arith.constant 0 : index
    %2 = vector.load %arg0[%c0_3, %c0_4] : memref<8x32xf32, #tpu.memory_space<vmem>>, vector<8x32xf32>
    %cst = arith.constant dense<0.000000e+00> : vector<16x8xf32>
    %3 = tpu.matmul %0, %2, %cst {dimension_numbers = #tpu.dot_dimension_numbers<[1], [1], [0], [0], [0, 0, 1, 0], [], []>} : vector<16x32xf32>, vector<8x32xf32>, vector<16x8xf32> -> vector<16x8xf32>
    %4 = vector.broadcast %1 : vector<16x1xf32> to vector<16x8xf32>
    %5 = arith.addf %3, %4 : vector<16x8xf32>
    %cst_5 = arith.constant 0.000000e+00 : f32
    %6 = vector.broadcast %cst_5 : f32 to vector<16x8xf32>
    %7 = arith.maximumf %5, %6 : vector<16x8xf32>
    %c0_6 = arith.constant 0 : index
    %c0_7 = arith.constant 0 : index
    %8 = vector.load %arg1[%c0_6, %c0_7] : memref<8x32xf32, #tpu.memory_space<vmem>>, vector<8x32xf32>
    %cst_8 = arith.constant dense<0.000000e+00> : vector<16x8xf32>
    %9 = tpu.matmul %0, %8, %cst_8 {dimension_numbers = #tpu.dot_dimension_numbers<[1], [1], [0], [0], [0, 0, 1, 0], [], []>} : vector<16x32xf32>, vector<8x32xf32>, vector<16x8xf32> -> vector<16x8xf32>
    %10 = vector.broadcast %1 : vector<16x1xf32> to vector<16x8xf32>
    %11 = arith.addf %9, %10 : vector<16x8xf32>
    %cst_9 = arith.constant 0.000000e+00 : f32
    %12 = vector.broadcast %cst_9 : f32 to vector<16x8xf32>
    %13 = arith.maximumf %11, %12 : vector<16x8xf32>
    %c0_10 = arith.constant 0 : index
    %c0_11 = arith.constant 0 : index
    %14 = vector.load %arg4[%c0_10, %c0_11] : memref<16x16xf32, #tpu.memory_space<vmem>>, vector<16x16xf32>
    %cst_12 = arith.constant dense<0.000000e+00> : vector<16x8xf32>
    %15 = tpu.matmul %14, %7, %cst_12 {dimension_numbers = #tpu.dot_dimension_numbers<[1], [0], [0], [1], [0, 0, 1, 1], [], []>} : vector<16x16xf32>, vector<16x8xf32>, vector<16x8xf32> -> vector<16x8xf32>
    %c0_13 = arith.constant 0 : index
    %c0_14 = arith.constant 0 : index
    %16 = vector.load %arg5[%c0_13, %c0_14] : memref<16x1xf32, #tpu.memory_space<vmem>>, vector<16x1xf32>
    %17 = vector.broadcast %16 : vector<16x1xf32> to vector<16x8xf32>
    %18 = arith.addf %15, %17 : vector<16x8xf32>
    %cst_15 = arith.constant 0.000000e+00 : f32
    %19 = vector.broadcast %cst_15 : f32 to vector<16x8xf32>
    %20 = arith.maximumf %18, %19 : vector<16x8xf32>
    %c0_16 = arith.constant 0 : index
    %c0_17 = arith.constant 0 : index
    %21 = vector.load %arg6[%c0_16, %c0_17] : memref<16x1xf32, #tpu.memory_space<vmem>>, vector<16x1xf32>
    %22 = vector.broadcast %21 : vector<16x1xf32> to vector<16x8xf32>
    %23 = arith.mulf %20, %22 : vector<16x8xf32>
    %cst_18 = arith.constant dense<0.000000e+00> : vector<8xf32>
    %24 = vector.multi_reduction <add>, %23, %cst_18 [0] : vector<16x8xf32> to vector<8xf32>
    %25 = vector.shape_cast %24 : vector<8xf32> to vector<1x8xf32>
    %c0_19 = arith.constant 0 : index
    %c0_20 = arith.constant 0 : index
    %26 = memref.load %arg8[%c0_19, %c0_20] : memref<1x1xf32, #tpu.memory_space<smem>>
    %27 = vector.broadcast %26 : f32 to vector<1x8xf32>
    %28 = arith.addf %25, %27 : vector<1x8xf32>
    %c0_21 = arith.constant 0 : index
    %c0_22 = arith.constant 0 : index
    %29 = vector.load %arg10[%c0_21, %c0_22] : memref<1x8xf32, #tpu.memory_space<vmem>>, vector<1x8xf32>
    tpu.vector_store %arg10[%c0_21, %c0_22], %28 {strides = array<i32>} : memref<1x8xf32, #tpu.memory_space<vmem>>, vector<1x8xf32>,
    %c0_23 = arith.constant 0 : index
    %c0_24 = arith.constant 0 : index
    %30 = vector.load %arg7[%c0_23, %c0_24] : memref<16x1xf32, #tpu.memory_space<vmem>>, vector<16x1xf32>
    %31 = vector.broadcast %30 : vector<16x1xf32> to vector<16x8xf32>
    %32 = arith.mulf %13, %31 : vector<16x8xf32>
    %cst_25 = arith.constant dense<0.000000e+00> : vector<8xf32>
    %33 = vector.multi_reduction <add>, %32, %cst_25 [0] : vector<16x8xf32> to vector<8xf32>
    %34 = vector.shape_cast %33 : vector<8xf32> to vector<1x8xf32>
    %c0_26 = arith.constant 0 : index
    %c0_27 = arith.constant 0 : index
    %35 = memref.load %arg9[%c0_26, %c0_27] : memref<1x1xf32, #tpu.memory_space<smem>>
    %36 = vector.broadcast %35 : f32 to vector<1x8xf32>
    %37 = arith.addf %34, %36 : vector<1x8xf32>
    %38 = arith.negf %37 : vector<1x8xf32>
    %39 = math.exp %38 : vector<1x8xf32>
    %cst_28 = arith.constant 1.000000e+00 : f32
    %40 = vector.broadcast %cst_28 : f32 to vector<1x8xf32>
    %41 = arith.addf %40, %39 : vector<1x8xf32>
    %42 = arith.divf %40, %41 : vector<1x8xf32>
    %c0_29 = arith.constant 0 : index
    %c0_30 = arith.constant 0 : index
    %43 = vector.load %arg11[%c0_29, %c0_30] : memref<1x8xf32, #tpu.memory_space<vmem>>, vector<1x8xf32>
    tpu.vector_store %arg11[%c0_29, %c0_30], %42 {strides = array<i32>} : memref<1x8xf32, #tpu.memory_space<vmem>>, vector<1x8xf32>,
    return
  }
}

</mosaic_0001>

<bundles_post_ra>
// kernel: tpu_custom_call.1
= control target key start
LH: loop header
LB: loop body
LE: loop exit
PB: predicated region body
PF: predicated region fallthrough
CT: control target
= control target key end

     0   :  { %19 = vsyncpa [#allocation5], 0  ;;  %vm56_vm0 = vcmask 261120   ;;  %s634_s0 = inlined_call_operand.vmem [shape: f32[8,32], index: 0, kind: input, shape index: {}]   ;;  %s635_s1 = inlined_call_operand.vmem [shape: f32[8,32], index: 1, kind: input, shape index: {}]   ;;  %s636_s2 = inlined_call_operand.vmem [shape: f32[16,32], index: 2, kind: input, shape index: {}]   ;;  %s637_s3 = inlined_call_operand.vmem [shape: f32[16,1], index: 3, kind: input, shape index: {}]   ;;  %s638_s4 = inlined_call_operand.vmem [shape: f32[16,16], index: 4, kind: input, shape index: {}]   ;;  %s639_s5 = inlined_call_operand.vmem [shape: f32[16,1], index: 5, kind: input, shape index: {}]   ;;  %s640_s6 = inlined_call_operand.vmem [shape: f32[16,1], index: 6, kind: input, shape index: {}]   ;;  %s641_s7 = inlined_call_operand.vmem [shape: f32[16,1], index: 7, kind: input, shape index: {}]   ;;  %s642_s8 = inlined_call_operand.<no memory space> [shape: f32[1,1], index: 8, kind: input, shape index: {}]   ;;  %s643_s9 = inlined_call_operand.<no memory space> [shape: f32[1,1], index: 9, kind: input, shape index: {}]   ;;  %s644_s10 = inlined_call_operand.hbm [shape: f32[1,8], index: 10, kind: output, shape index: {0}]   ;;  %s645_s11 = inlined_call_operand.hbm [shape: f32[1,8], index: 11, kind: output, shape index: {1}]  }
   0x1   :  { %v45_v0 = vld [vmem:[%s634_s0] sm:$0xff]  ;;  %v42_v3 = vld [vmem:[%s636_s2 + $0x8] sm:$0xff] }
   0x2   :  { %v143_v1 = vld [vmem:[%s635_s1] sm:$0xff]  ;;  %431 = vmatprep.subr.msk.mxu0 %vm56_vm0, %v45_v0  ;;  %v44_v4 = vld [vmem:[%s637_s3 + $0x8] sm:$0xff] }
   0x3   :  { %v41_v2 = vld [vmem:[%s636_s2] sm:$0xff]  ;;  %436 = vmatprep.subr.msk.mxu1 %vm56_vm0, %v143_v1  ;;  %432 = vmatpush3.xpose.msk.msra.mxu0 %vm56_vm0, %v45_v0 }
   0x4   :  { %437 = vmatpush3.xpose.msk.msra.mxu1 %vm56_vm0, %v143_v1  ;;  %433 = vmatprep.mubr.msk.f32.mxu0 %vm56_vm0, %v41_v2  ;;  %v351_v5 = vld [vmem:[%s641_s7] sm:$0xff] }
   0x5   :  { %438 = vmatprep.mubr.msk.f32.mxu1 %vm56_vm0, %v41_v2 }
   0x6   :  { %20 = vsyncpa [#allocation7], 0  ;;  %v501_v6 = vmov 0   ;;  %434 = vmatmul.mubr.msk.f32.vlgmr.msra.gmra.mxu0 %vm56_vm0, %v42_v3  ;;  %v43_v7 = vld [vmem:[%s637_s3] sm:$0xff]  ;;  %v352_v8 = vld [vmem:[%s641_s7 + $0x8] sm:$0xff]  ;;  %vm238_vm1 = vcmask 130048   ;;  %v375_v41 = vstv %s643_s9 }
   0x7   :  { %451 = vset.pattern.permute.xlu0 %v501_v6  ;;  %452 = vset.pattern.permute.xlu1 %v501_v6  ;;  %v226_v9 = vld [vmem:[%s639_s5] sm:$0xff]  ;;  %v227_v12 = vld [vmem:[%s639_s5 + $0x8] sm:$0xff]  ;;  %vm336_vm2 = vcmask 64512   ;;  %vm349_vm3 = vcmask 57344  }
   0x8   :  { %439 = vmatmul.mubr.msk.f32.vlgmr.msra.gmra.mxu1 %vm56_vm0, %v42_v3  ;;  %53 = vperm.xlu0 %451, %v44_v4   ;;  %v322_v10 = vld [vmem:[%s640_s6] sm:$0xff]  ;;  %v323_v13 = vld [vmem:[%s640_s6 + $0x8] sm:$0xff] }
   0x9   :  { %355 = vperm.xlu1 %452, %v351_v5   ;;  %v224_v11 = vld [vmem:[%s638_s4] sm:$0xff]  ;;  %v225_v31 = vld [vmem:[%s638_s4 + $0x8] sm:$0xff]  ;;  %s502_s4 = smov [#allocation6]  }
   0xa   :  { %445 = vmatprep.mubr.msk.f32.mxu0 %vm238_vm1, %v224_v11  ;;  %s400_s21 = sshll.u32 %s502_s4, 4  ;;  %s401_s21 = int_to_ptr.vmem [resolvable:$true] %s400_s21 }
   0xb   :  { %s457_s22 = scalar_lea.vmem %s401_s21, 16  ;;  %s461_s23 = scalar_lea.vmem %s401_s21, 32 }
   0xc   :  { %48 = vperm.xlu0 %451, %v43_v7   ;;  %p458_p0 = scmp.ne.s32.totalorder %s401_s21, %s457_s22  ;;  %p462_p1 = scmp.lt.s32.totalorder %s401_s21, %s401_s21 }
   0xd   :  { %360 = vperm.xlu1 %452, %v352_v8   ;;  %p463_p2 = scmp.lt.s32.totalorder %s461_s23, %s457_s22 }
   0xf   :  { %p464_p3 = por %p463_p2, %p462_p1 }
  0x10   :  { %230 = vperm.xlu0 %451, %v226_v9  }
  0x11   :  { %235 = vperm.xlu1 %452, %v227_v12   ;;  %p465_p4 = pnand %p464_p3, %p458_p0 }
  0x14   :  { %326 = vperm.xlu0 %451, %v322_v10  }
  0x15   :  { %331 = vperm.xlu1 %452, %v323_v13  }
  0x83   :  { %v54_v14 = vpop.permute.xlu0 %53 }
  0x84   :  { %v356_v15 = vpop.permute.xlu1 %355 }
  0x87   :  { %v49_v18 = vpop.permute.xlu0 %48 }
  0x88   :  { %v361_v21 = vpop.permute.xlu1 %360 }
  0xc6   :  { %v435_v16 = vpop.f32.mrf.mxu0 }
  0xc7   :  { %v138_v19 = vadd.f32 %v435_v16, %v54_v14 }
  0xc8   :  { %v440_v17 = vpop.f32.mrf.mxu1  ;;  %v132_v22 = vpop.f32.mrf.mxu0 }
  0xc9   :  { %v219_v20 = vadd.f32 %v440_v17, %v54_v14  ;;  %v142_v24 = vmax.f32 %v138_v19, 0.0  ;;  %v133_v26 = vadd.f32 %v132_v22, %v49_v18 }
  0xca   :  { %v213_v23 = vpop.f32.mrf.mxu1 }
  0xcb   :  { %v223_v25 = vmax.f32 %v219_v20, 0.0  ;;  %v214_v27 = vadd.f32 %v213_v23, %v49_v18  ;;  %v141_v28 = vmax.f32 %v133_v26, 0.0  ;;  %441 = vmatprep.subr.mxu0 %v142_v24 }
  0xcc   :  { %442 = vmatpush3.msra.mxu0 %v142_v24 }
  0xcd   :  { %v222_v29 = vmax.f32 %v214_v27, 0.0  ;;  %v364_v30 = vmul.f32 %v361_v21, %v223_v25  ;;  %443 = vmatprep.subr.mxu0 %v141_v28 }
  0xce   :  { %444 = vmatpush3.msra.mxu0 %v141_v28 }
  0xcf   :  { %v363_v32 = vmul.f32 %v356_v15, %v222_v29  ;;  %v366_v34 = vsel %vm336_vm2, %v364_v30, 0.0  ;;  %446 = vmatmul.mubr.msk.f32.vlgmr.msra.gmra.mxu0 %vm238_vm1, %v225_v31 }
  0xd1   :  { %v365_v33 = vsel %vm336_vm2, %v363_v32, 0.0 }
  0xd2   :  { %v367_v35 = vadd.f32 %v366_v34, %v365_v33 }
  0xd4   :  { %v368_v36 = vrot.slane %v367_v35, 4 }
  0xd6   :  { %v369_v37 = vadd.f32 %v368_v36, %v367_v35 }
  0xd8   :  { %v370_v38 = vrot.slane %v369_v37, 2 }
  0xda   :  { %v371_v39 = vadd.f32 %v370_v38, %v369_v37 }
  0xdc   :  { %v372_v40 = vrot.slane %v371_v39, 1 }
  0xde   :  { %v373_v42 = vadd.f32 %v372_v40, %v371_v39 }
  0xe0   :  { %v376_v43 = vadd.f32 %v375_v41, %v373_v42 }
  0xe2   :  { %v420_v44 = vmul.f32 -1.442695, %v376_v43 }
  0xe4   :  { %453 = vpow2.f32 %v420_v44 }
  0xf1   :  { %v454_v45 = vpop.eup %453 }
  0xf2   :  { %v380_v46 = vadd.f32 1.0, %v454_v45 }
  0xf4   :  { %455 = vrcp.f32 %v380_v46 }
 0x101   :  { %v456_v47 = vpop.eup %455 }
 0x102   :  { %383 = vst.msk [vmem:[#allocation6] sm:$0x1] %vm349_vm3, %v456_v47 }
 0x103   :  { %468 = shalt.err (!%p465_p4)
}
 0x104   :  { %403 = dma.vmem_to_hbm [thread:$0]  %s401_s21, 16, %s645_s11, [#allocation7]   ;;  %v236_v48 = vpop.permute.xlu1 %235  ;;  %v231_v49 = vpop.permute.xlu0 %230  ;;  %v347_v4 = vstv %s642_s8 }
 0x105   :  { %s503_s1 = smov [#allocation4]  }
 0x106   :  { %s390_s25 = sshll.u32 %s503_s1, 4  ;;  %s391_s25 = int_to_ptr.vmem [resolvable:$true] %s390_s25 }
 0x107   :  { %s477_s26 = scalar_lea.vmem %s391_s25, 16  ;;  %s481_s2 = scalar_lea.vmem %s391_s25, 32 }
 0x108   :  { %v332_v55 = vpop.permute.xlu1 %331  ;;  %v327_v58 = vpop.permute.xlu0 %326  ;;  %p478_p5 = scmp.ne.s32.totalorder %s391_s25, %s477_s26  ;;  %p482_p6 = scmp.lt.s32.totalorder %s391_s25, %s391_s25 }
 0x109   :  { %p483_p7 = scmp.lt.s32.totalorder %s481_s2, %s477_s26 }
 0x10b   :  { %p484_p8 = por %p483_p7, %p482_p6 }
 0x10d   :  { %p485_p9 = pnand %p484_p8, %p478_p5 }
 0x18f   :  { %v447_v50 = vpop.f32.mrf.mxu0 }
 0x190   :  { %v317_v51 = vadd.f32 %v447_v50, %v236_v48 }
 0x191   :  { %v311_v52 = vpop.f32.mrf.mxu0 }
 0x192   :  { %v321_v53 = vmax.f32 %v317_v51, 0.0  ;;  %v312_v54 = vadd.f32 %v311_v52, %v231_v49 }
 0x194   :  { %v335_v56 = vmul.f32 %v332_v55, %v321_v53  ;;  %v320_v57 = vmax.f32 %v312_v54, 0.0 }
 0x196   :  { %v334_v59 = vmul.f32 %v327_v58, %v320_v57  ;;  %v338_v60 = vsel %vm336_vm2, %v335_v56, 0.0 }
 0x198   :  { %v337_v61 = vsel %vm336_vm2, %v334_v59, 0.0 }
 0x199   :  { %v339_v62 = vadd.f32 %v338_v60, %v337_v61 }
 0x19b   :  { %v340_v63 = vrot.slane %v339_v62, 4 }
 0x19d   :  { %v341_v0 = vadd.f32 %v340_v63, %v339_v62 }
 0x19f   :  { %v342_v1 = vrot.slane %v341_v0, 2 }
 0x1a1   :  { %v343_v2 = vadd.f32 %v342_v1, %v341_v0 }
 0x1a3   :  { %v344_v3 = vrot.slane %v343_v2, 1 }
 0x1a5   :  { %v345_v5 = vadd.f32 %v344_v3, %v343_v2 }
 0x1a7   :  { %v348_v6 = vadd.f32 %v347_v4, %v345_v5 }
 0x1a9   :  { %350 = vst.msk [vmem:[#allocation4] sm:$0x1] %vm349_vm3, %v348_v6 }
 0x1aa   :  { %488 = shalt.err (!%p485_p9)
}
 0x1ab   :  { %393 = dma.vmem_to_hbm [thread:$0]  %s391_s25, 16, %s644_s10, [#allocation5]  }
 0x1ac   :  { %497 = dma.done.wait [#allocation5], 16  }
 0x1ad   :  { %498 = vsyncadd [#allocation5], 4294967280 }
 0x1ae   :  { %499 = dma.done.wait [#allocation7], 16  }
 0x1af   :  { %500 = vsyncadd [#allocation7], 4294967280 }
 0x1b0   :  { %410 = vsyncpa [#allocation5], 1 }
 0x1b1   :  { %411 = vsyncpa [#allocation7], 1 }

</bundles_post_ra>
